<compile_context>
chip_gen: v6e
topology: v6e:2x2x1
jax: 0.10.0
libtpu: 0.0.40
codegen_flags: <defaults>
</compile_context>

<pallas_src>
import numpy as np
import jax
import jax.numpy as jnp
from jax.experimental import pallas as pl
from jax.experimental.pallas import tpu as pltpu

LANE = 128
SUBLANE = 8
NEG_INF = -1e30


def _round_up(x, m):
    return (x + m - 1) // m * m


def _vmem_capacity_bytes():
    try:
        return int(pltpu.get_tpu_info().vmem_capacity_bytes)
    except Exception:
        return 64 << 20        # conservative default (v7x per-TensorCore VMEM)


def hierarchical_proco_kernel(feat_ref, w_fold_ref, sb_ref, out_ref):
    """feat [tile_n, D_pad] bf16; w_fold [D_pad, (1+P)*L_pad] bf16 unit columns;
    sb [2, (1+P)*L_pad] f32 (row 0 = per-column scale, row 1 = additive bias);
    out [tile_n, L_pad]."""
    l_pad = out_ref.shape[-1]
    fold_cols = w_fold_ref.shape[-1]
    # Trace-time layout guards: build_path_weights and the kernel must agree.
    assert fold_cols % l_pad == 0 and fold_cols // l_pad >= 2
    assert sb_ref.shape[0] == 2 and sb_ref.shape[-1] == fold_cols
    num_chunks = fold_cols // l_pad            # 1 (root+leaf merged) + max_protos

    # Cosine-normalize the feature tile in f32 (ProCo operates on the hypersphere),
    # then narrow to bf16 for the MXU (accumulation stays f32).
    feat = feat_ref[...].astype(jnp.float32)                        # [tile_n, D_pad]
    inv_norm = jax.lax.rsqrt(jnp.sum(feat * feat, axis=-1, keepdims=True) + 1e-12)
    feat_n = (feat * inv_norm).astype(jnp.bfloat16)

    def chunk_term(c):
        lo = c * l_pad
        logits = jnp.dot(feat_n, w_fold_ref[:, lo:lo + l_pad],
                         preferred_element_type=jnp.float32)        # [tile_n, L_pad]
        scale = sb_ref[0:1, lo:lo + l_pad]        # f32 column norm (carries kappa)
        bias = sb_ref[1:2, lo:lo + l_pad]         # 0 valid slot / -1e30 padded slot
        return logits * scale + bias

    root_plus_leaf = chunk_term(0)                # bias row is all-zero for chunk 0
    best = chunk_term(1)
    for c in range(2, num_chunks):                # small static unroll over proto chunks
        best = jnp.maximum(best, chunk_term(c))

    out_ref[...] = (root_plus_leaf + best).astype(out_ref.dtype)


def _plan_tiles(n, d_pad, fold_cols, l_pad, out_bytes, vmem_cap):
    """VMEM-aware tile_n and vmem_limit_bytes (single-buffered resident slab assumed)."""
    slab = d_pad * fold_cols * 2               # resident bf16 slab, single-buffered
    sb = 2 * fold_cols * 4                     # resident f32 scale/bias
    per_row = (2 * d_pad * 2                   # double-buffered bf16 feature tile
               + 2 * l_pad * out_bytes         # double-buffered output tile
               + 6 * d_pad + 12 * l_pad)       # in-kernel f32 normalize + accumulators
    budget = int(vmem_cap * 0.70) - slab - sb
    rows = max(SUBLANE, budget // max(per_row, 1))
    if rows >= 256:
        # Full 2x256x256 MXU passes on v6e/v7x; also near the HBM-roofline sweet spot.
        rows = min(1024, rows // 256 * 256)
    else:
        rows = rows // SUBLANE * SUBLANE
    rows = max(SUBLANE, min(rows, _round_up(n, SUBLANE)))
    working = slab + sb + rows * per_row
    vmem_limit = max(working + (8 << 20), 16 << 20)
    vmem_limit = int(min(vmem_limit, vmem_cap - (2 << 20)))   # never exceed physical VMEM
    return rows, vmem_limit


def hierarchical_proco_forward(features, w_fold_t, scale_bias, *, num_leaves, l_pad,
                               out_dtype=jnp.float32):
    """features: [N, D]; w_fold_t: [D_pad, (1+P)*L_pad] bf16 unit columns;
    scale_bias: [2, (1+P)*L_pad] f32. Returns [N, num_leaves] leaf logits."""
    n, d = features.shape
    d_pad, fold_cols = w_fold_t.shape
    assert fold_cols % l_pad == 0 and num_leaves <= l_pad and d <= d_pad
    assert scale_bias.shape == (2, fold_cols)

    # Stream features as bf16 (halves dominant HBM read traffic); fuse any D-pad into the cast.
    feat = features
    if d_pad != d:
        feat = jnp.pad(feat, ((0, 0), (0, d_pad - d)))
    feat = feat.astype(jnp.bfloat16)

    out_bytes = jnp.dtype(out_dtype).itemsize
    vmem_cap = _vmem_capacity_bytes()
    tile_n, vmem_limit = _plan_tiles(n, d_pad, fold_cols, l_pad, out_bytes, vmem_cap)
    grid = (pl.cdiv(n, tile_n),)   # ragged last block handled by Pallas, no host-side N pad

    def make_call(single_buffer):
        # Constant index maps -> the slab & scale/bias never change; single-buffer them so
        # their VMEM footprint is halved and tile_n can grow.
        resident = dict(pipeline_mode=pl.Buffered(1)) if single_buffer else {}
        return pl.pallas_call(
            hierarchical_proco_kernel,
            out_shape=jax.ShapeDtypeStruct((n, l_pad), out_dtype),
            grid=grid,
            in_specs=[
                pl.BlockSpec((tile_n, d_pad), lambda i: (i, 0)),               # streamed
                pl.BlockSpec((d_pad, fold_cols), lambda i: (0, 0), **resident),  # resident
                pl.BlockSpec((2, fold_cols), lambda i: (0, 0), **resident),      # resident
            ],
            out_specs=pl.BlockSpec((tile_n, l_pad), lambda i: (i, 0)),
            compiler_params=pltpu.CompilerParams(
                dimension_semantics=("parallel",),     # megacore shards the batch axis
                vmem_limit_bytes=vmem_limit),
        )

    try:
        out = jax.block_until_ready(make_call(True)(feat, w_fold_t, scale_bias))
    except Exception:
        # TODO(synk): drop fallback once pl.Buffered(1) single-buffering is guaranteed
        # across all supported TPU generations / JAX versions.
        out = make_call(False)(feat, w_fold_t, scale_bias)

    return out[:, :num_leaves]


def build_path_weights(leaf_node_ids, leaf_path_map, mu, kappa, col_granularity=None):
    """Fold kappa and the hierarchy's path structure into per-leaf weight slabs.

    Returns:
      w_fold_t   [D_pad, (1+P)*L_pad] bf16 : UNIT-NORM columns; chunk 0 = root+leaf merged,
                                             chunk 1+p = p-th intermediate prototype.
      scale_bias [2, (1+P)*L_pad]     f32  : row 0 = per-column norm (carries kappa),
                                             row 1 = additive mask (0 valid / -1e30 padded).
      num_leaves, max_protos, l_pad
    """
    mu = np.asarray(mu, np.float32)
    kappa = np.asarray(kappa, np.float32)
    num_leaves = len(leaf_node_ids)
    d = mu.shape[1]
    max_protos = max(1, max(len(leaf_path_map[l]) - 2 for l in leaf_node_ids))
    if col_granularity is None:
        # 256-wide column chunks keep the 2x256x256 MXU (v6e/v7x) fully fed once the leaf
        # count is large; for small hierarchies 128 keeps the slab minimal.
        col_granularity = 256 if num_leaves >= 256 else LANE
    d_pad = _round_up(d, LANE)
    l_pad = _round_up(num_leaves, col_granularity)
    fold_cols = (1 + max_protos) * l_pad

    mu_n = mu / np.linalg.norm(mu, axis=-1, keepdims=True)
    w_scaled = mu_n * kappa[:, None]                 # kappa folded into the prototypes

    w_fold = np.zeros((d_pad, fold_cols), np.float32)
    scale_bias = np.zeros((2, fold_cols), np.float32)
    scale_bias[0, :] = 1.0                           # default per-column scale
    scale_bias[1, l_pad:] = NEG_INF                  # proto slots default to "padded"
    # Padded leaf columns (>= num_leaves): give them one valid zero slot so the unsliced
    # output buffer reads exactly 0 there (safe for any future fusion, e.g. softmax).
    scale_bias[1, l_pad + num_leaves:2 * l_pad] = 0.0

    for leaf_idx, leaf_id in enumerate(leaf_node_ids):
        path = leaf_path_map[leaf_id]
        # Root and leaf contributions are always summed -> merge into one column.
        w_fold[:d, leaf_idx] = w_scaled[path[0]] + w_scaled[path[-1]]
        inter = path[1:-1]
        if not inter:
            # Leaf attached directly to the root: max-over-protos contributes 0.
            scale_bias[1, l_pad + leaf_idx] = 0.0
        for p, pid in enumerate(inter):
            w_fold[:d, (1 + p) * l_pad + leaf_idx] = w_scaled[pid]
            scale_bias[1, (1 + p) * l_pad + leaf_idx] = 0.0

    # Unit-normalize columns for bf16 storage; the norm (which carries kappa) becomes an f32
    # per-column scale applied post-matmul, so rounding error is independent of kappa size.
    col_norm = np.linalg.norm(w_fold, axis=0)
    nz = col_norm > 0
    safe_norm = np.where(nz, col_norm, 1.0)
    scale_bias[0, :] = np.where(nz, col_norm, 1.0)
    w_unit = w_fold / safe_norm[None, :]

    return (jnp.asarray(w_unit, jnp.bfloat16), jnp.asarray(scale_bias, jnp.float32),
            num_leaves, max_protos, l_pad)


def reference_forward(features, mu, kappa, leaf_node_ids, leaf_path_map):
    """Pure-JAX f32 reference mirroring HierarchicalProCoWrapper.forward (leaf_labels=None)."""
    mu_n = mu / jnp.linalg.norm(mu, axis=-1, keepdims=True)
    feat_n = features / jnp.linalg.norm(features, axis=-1, keepdims=True)
    node_logits = (feat_n @ mu_n.T) * kappa[None, :]
    cols = []
    for leaf_id in leaf_node_ids:
        path = leaf_path_map[leaf_id]
        root_log = node_logits[:, path[0]]
        leaf_log = node_logits[:, path[-1]]
        inter = path[1:-1]
        if inter:
            best = jnp.max(jnp.stack([node_logits[:, pid] for pid in inter], axis=1), axis=1)
        else:
            best = jnp.zeros_like(root_log)     # no intermediate prototypes on this path
        cols.append(root_log + best + leaf_log)
    return jnp.stack(cols, axis=1)


if __name__ == "__main__":
    # Hierarchy: root -> 4 superclasses -> 16 leaves; two superclasses get an extra "mid"
    # level so path lengths differ (exercises the masked / padded proto slots).
    num_super, leaves_per_super = 4, 4
    num_leaves = num_super * leaves_per_super
    super_ids = list(range(1, 1 + num_super))                     # 1..4
    mid_ids = {super_ids[2]: 5, super_ids[3]: 6}                   # supers 3,4 get a mid node
    first_leaf = 7
    leaf_node_ids = list(range(first_leaf, first_leaf + num_leaves))
    num_nodes = first_leaf + num_leaves                            # 23 nodes total
    leaf_path_map = {}
    for idx, leaf_id in enumerate(leaf_node_ids):
        s = super_ids[idx // leaves_per_super]
        leaf_path_map[leaf_id] = [0, s] + ([mid_ids[s]] if s in mid_ids else []) + [leaf_id]

    N, D = 8, 32
    key = jax.random.PRNGKey(0)
    k_feat, k_mu, k_kappa = jax.random.split(key, 3)

    features = jax.random.normal(k_feat, (N, D), dtype=jnp.float32)
    # Deterministic "ProCoLoss" parameters: unit-norm vMF prototypes + concentration kappa.
    mu = jax.random.normal(k_mu, (num_nodes, D), dtype=jnp.float32)
    kappa = 1.0 + jax.random.uniform(k_kappa, (num_nodes,), dtype=jnp.float32)

    w_fold_t, scale_bias, n_leaves, max_protos, l_pad = build_path_weights(
        leaf_node_ids, leaf_path_map, np.asarray(mu), np.asarray(kappa))

    leaf_logits = hierarchical_proco_forward(
        features, w_fold_t, scale_bias, num_leaves=n_leaves, l_pad=l_pad)
    leaf_logits = jax.block_until_ready(leaf_logits)

    ref = reference_forward(features, mu, kappa, leaf_node_ids, leaf_path_map)
    # Tolerance sized for bf16 MXU operands (bf16 features + unit-norm bf16 prototype
    # columns; kappa applied as an exact f32 post-scale; accumulation is f32). Structural
    # errors would be O(1) .. O(1e30), far outside this band.
    np.testing.assert_allclose(np.asarray(leaf_logits), np.asarray(ref),
                               rtol=2e-2, atol=4e-2)
    print("KERNEL_OK")
</pallas_src>

<mosaic_0001>
module attributes {stable_mosaic.version = 11 : i64} {
  func.func @hierarchical_proco_kernel(%arg0: i32, %arg1: memref<8x128xbf16, #tpu.memory_space<vmem>>, %arg2: memref<128x384xbf16, #tpu.memory_space<vmem>>, %arg3: memref<2x384xf32, #tpu.memory_space<vmem>>, %arg4: memref<8x128xf32, #tpu.memory_space<vmem>>) attributes {dimension_semantics = [#tpu.dimension_semantics<parallel>], iteration_bounds = array<i64: 1>, scalar_prefetch = 0 : i64, scratch_operands = 0 : i64, tpu.core_type = #tpu.core_type<tc>, window_params = [{transform_indices = @transform_0, window_bounds = array<i64: 8, 128>}, {pipeline_mode = #tpu.pipeline_mode<synchronous>, transform_indices = @transform_1, window_bounds = array<i64: 128, 384>}, {pipeline_mode = #tpu.pipeline_mode<synchronous>, transform_indices = @transform_2, window_bounds = array<i64: 2, 384>}, {transform_indices = @transform_3, window_bounds = array<i64: 8, 128>}]} {
    %c0 = arith.constant 0 : index
    %c0_0 = arith.constant 0 : index
    %0 = vector.load %arg1[%c0, %c0_0] : memref<8x128xbf16, #tpu.memory_space<vmem>>, vector<8x128xbf16>
    %1 = arith.extf %0 : vector<8x128xbf16> to vector<8x128xf32>
    %2 = arith.mulf %1, %1 : vector<8x128xf32>
    %cst = arith.constant dense<0.000000e+00> : vector<8xf32>
    %3 = vector.multi_reduction <add>, %2, %cst [1] : vector<8x128xf32> to vector<8xf32>
    %4 = vector.shape_cast %3 : vector<8xf32> to vector<8x1xf32>
    %cst_1 = arith.constant 9.99999996E-13 : f32
    %5 = vector.broadcast %cst_1 : f32 to vector<8x1xf32>
    %6 = arith.addf %4, %5 : vector<8x1xf32>
    %7 = math.rsqrt %6 : vector<8x1xf32>
    %8 = vector.broadcast %7 : vector<8x1xf32> to vector<8x128xf32>
    %9 = arith.mulf %1, %8 : vector<8x128xf32>
    %10 = arith.truncf %9 : vector<8x128xf32> to vector<8x128xbf16>
    %c0_2 = arith.constant 0 : index
    %c0_3 = arith.constant 0 : index
    %11 = vector.load %arg2[%c0_2, %c0_3] : memref<128x384xbf16, #tpu.memory_space<vmem>>, vector<128x128xbf16>
    %cst_4 = arith.constant dense<0.000000e+00> : vector<8x128xf32>
    %12 = tpu.matmul %10, %11, %cst_4 {dimension_numbers = #tpu.dot_dimension_numbers<[1], [0], [0], [1], [0, 0, 1, 1], [], []>} : vector<8x128xbf16>, vector<128x128xbf16>, vector<8x128xf32> -> vector<8x128xf32>
    %c0_5 = arith.constant 0 : index
    %c0_6 = arith.constant 0 : index
    %13 = vector.load %arg3[%c0_5, %c0_6] : memref<2x384xf32, #tpu.memory_space<vmem>>, vector<1x128xf32>
    %c1 = arith.constant 1 : index
    %c0_7 = arith.constant 0 : index
    %14 = vector.load %arg3[%c1, %c0_7] : memref<2x384xf32, #tpu.memory_space<vmem>>, vector<1x128xf32>
    %15 = vector.broadcast %13 : vector<1x128xf32> to vector<8x128xf32>
    %16 = arith.mulf %12, %15 : vector<8x128xf32>
    %17 = vector.broadcast %14 : vector<1x128xf32> to vector<8x128xf32>
    %18 = arith.addf %16, %17 : vector<8x128xf32>
    %c0_8 = arith.constant 0 : index
    %c128 = arith.constant 128 : index
    %19 = vector.load %arg2[%c0_8, %c128] : memref<128x384xbf16, #tpu.memory_space<vmem>>, vector<128x128xbf16>
    %cst_9 = arith.constant dense<0.000000e+00> : vector<8x128xf32>
    %20 = tpu.matmul %10, %19, %cst_9 {dimension_numbers = #tpu.dot_dimension_numbers<[1], [0], [0], [1], [0, 0, 1, 1], [], []>} : vector<8x128xbf16>, vector<128x128xbf16>, vector<8x128xf32> -> vector<8x128xf32>
    %c0_10 = arith.constant 0 : index
    %c128_11 = arith.constant 128 : index
    %21 = vector.load %arg3[%c0_10, %c128_11] : memref<2x384xf32, #tpu.memory_space<vmem>>, vector<1x128xf32>
    %c1_12 = arith.constant 1 : index
    %c128_13 = arith.constant 128 : index
    %22 = vector.load %arg3[%c1_12, %c128_13] : memref<2x384xf32, #tpu.memory_space<vmem>>, vector<1x128xf32>
    %23 = vector.broadcast %21 : vector<1x128xf32> to vector<8x128xf32>
    %24 = arith.mulf %20, %23 : vector<8x128xf32>
    %25 = vector.broadcast %22 : vector<1x128xf32> to vector<8x128xf32>
    %26 = arith.addf %24, %25 : vector<8x128xf32>
    %c0_14 = arith.constant 0 : index
    %c256 = arith.constant 256 : index
    %27 = vector.load %arg2[%c0_14, %c256] : memref<128x384xbf16, #tpu.memory_space<vmem>>, vector<128x128xbf16>
    %cst_15 = arith.constant dense<0.000000e+00> : vector<8x128xf32>
    %28 = tpu.matmul %10, %27, %cst_15 {dimension_numbers = #tpu.dot_dimension_numbers<[1], [0], [0], [1], [0, 0, 1, 1], [], []>} : vector<8x128xbf16>, vector<128x128xbf16>, vector<8x128xf32> -> vector<8x128xf32>
    %c0_16 = arith.constant 0 : index
    %c256_17 = arith.constant 256 : index
    %29 = vector.load %arg3[%c0_16, %c256_17] : memref<2x384xf32, #tpu.memory_space<vmem>>, vector<1x128xf32>
    %c1_18 = arith.constant 1 : index
    %c256_19 = arith.constant 256 : index
    %30 = vector.load %arg3[%c1_18, %c256_19] : memref<2x384xf32, #tpu.memory_space<vmem>>, vector<1x128xf32>
    %31 = vector.broadcast %29 : vector<1x128xf32> to vector<8x128xf32>
    %32 = arith.mulf %28, %31 : vector<8x128xf32>
    %33 = vector.broadcast %30 : vector<1x128xf32> to vector<8x128xf32>
    %34 = arith.addf %32, %33 : vector<8x128xf32>
    %35 = arith.maximumf %26, %34 : vector<8x128xf32>
    %36 = arith.addf %18, %35 : vector<8x128xf32>
    %c0_20 = arith.constant 0 : index
    %c0_21 = arith.constant 0 : index
    %37 = vector.load %arg4[%c0_20, %c0_21] : memref<8x128xf32, #tpu.memory_space<vmem>>, vector<8x128xf32>
    tpu.vector_store %arg4[%c0_20, %c0_21], %36 {strides = array<i32>} : memref<8x128xf32, #tpu.memory_space<vmem>>, vector<8x128xf32>,
    return
  }
  func.func @transform_0(%arg0: i32) -> (i32, i32) {
    %c0_i32 = arith.constant 0 : i32
    %c0_i32_0 = arith.constant 0 : i32
    return %arg0, %c0_i32 : i32, i32
  }
  func.func @transform_1(%arg0: i32) -> (i32, i32) {
    %c0_i32 = arith.constant 0 : i32
    %c0_i32_0 = arith.constant 0 : i32
    %c0_i32_1 = arith.constant 0 : i32
    return %c0_i32, %c0_i32_0 : i32, i32
  }
  func.func @transform_2(%arg0: i32) -> (i32, i32) {
    %c0_i32 = arith.constant 0 : i32
    %c0_i32_0 = arith.constant 0 : i32
    %c0_i32_1 = arith.constant 0 : i32
    return %c0_i32, %c0_i32_0 : i32, i32
  }
  func.func @transform_3(%arg0: i32) -> (i32, i32) {
    %c0_i32 = arith.constant 0 : i32
    %c0_i32_0 = arith.constant 0 : i32
    return %arg0, %c0_i32 : i32, i32
  }
}

module attributes {stable_mosaic.version = 11 : i64} {
  func.func @hierarchical_proco_kernel(%arg0: i32, %arg1: memref<8x128xbf16, #tpu.memory_space<vmem>>, %arg2: memref<128x384xbf16, #tpu.memory_space<vmem>>, %arg3: memref<2x384xf32, #tpu.memory_space<vmem>>, %arg4: memref<8x128xf32, #tpu.memory_space<vmem>>) attributes {dimension_semantics = [#tpu.dimension_semantics<parallel>], iteration_bounds = array<i64: 1>, scalar_prefetch = 0 : i64, scratch_operands = 0 : i64, tpu.core_type = #tpu.core_type<tc>, window_params = [{transform_indices = @transform_0, window_bounds = array<i64: 8, 128>}, {pipeline_mode = #tpu.pipeline_mode<synchronous>, transform_indices = @transform_1, window_bounds = array<i64: 128, 384>}, {pipeline_mode = #tpu.pipeline_mode<synchronous>, transform_indices = @transform_2, window_bounds = array<i64: 2, 384>}, {transform_indices = @transform_3, window_bounds = array<i64: 8, 128>}]} {
    %c0 = arith.constant 0 : index
    %c0_0 = arith.constant 0 : index
    %0 = vector.load %arg1[%c0, %c0_0] : memref<8x128xbf16, #tpu.memory_space<vmem>>, vector<8x128xbf16>
    %1 = arith.extf %0 : vector<8x128xbf16> to vector<8x128xf32>
    %2 = arith.mulf %1, %1 : vector<8x128xf32>
    %cst = arith.constant dense<0.000000e+00> : vector<8xf32>
    %3 = vector.multi_reduction <add>, %2, %cst [1] : vector<8x128xf32> to vector<8xf32>
    %4 = vector.shape_cast %3 : vector<8xf32> to vector<8x1xf32>
    %cst_1 = arith.constant 9.99999996E-13 : f32
    %5 = vector.broadcast %cst_1 : f32 to vector<8x1xf32>
    %6 = arith.addf %4, %5 : vector<8x1xf32>
    %7 = math.rsqrt %6 : vector<8x1xf32>
    %8 = vector.broadcast %7 : vector<8x1xf32> to vector<8x128xf32>
    %9 = arith.mulf %1, %8 : vector<8x128xf32>
    %10 = arith.truncf %9 : vector<8x128xf32> to vector<8x128xbf16>
    %c0_2 = arith.constant 0 : index
    %c0_3 = arith.constant 0 : index
    %11 = vector.load %arg2[%c0_2, %c0_3] : memref<128x384xbf16, #tpu.memory_space<vmem>>, vector<128x128xbf16>
    %cst_4 = arith.constant dense<0.000000e+00> : vector<8x128xf32>
    %12 = tpu.matmul %10, %11, %cst_4 {dimension_numbers = #tpu.dot_dimension_numbers<[1], [0], [0], [1], [0, 0, 1, 1], [], []>} : vector<8x128xbf16>, vector<128x128xbf16>, vector<8x128xf32> -> vector<8x128xf32>
    %c0_5 = arith.constant 0 : index
    %c0_6 = arith.constant 0 : index
    %13 = vector.load %arg3[%c0_5, %c0_6] : memref<2x384xf32, #tpu.memory_space<vmem>>, vector<1x128xf32>
    %c1 = arith.constant 1 : index
    %c0_7 = arith.constant 0 : index
    %14 = vector.load %arg3[%c1, %c0_7] : memref<2x384xf32, #tpu.memory_space<vmem>>, vector<1x128xf32>
    %15 = vector.broadcast %13 : vector<1x128xf32> to vector<8x128xf32>
    %16 = arith.mulf %12, %15 : vector<8x128xf32>
    %17 = vector.broadcast %14 : vector<1x128xf32> to vector<8x128xf32>
    %18 = arith.addf %16, %17 : vector<8x128xf32>
    %c0_8 = arith.constant 0 : index
    %c128 = arith.constant 128 : index
    %19 = vector.load %arg2[%c0_8, %c128] : memref<128x384xbf16, #tpu.memory_space<vmem>>, vector<128x128xbf16>
    %cst_9 = arith.constant dense<0.000000e+00> : vector<8x128xf32>
    %20 = tpu.matmul %10, %19, %cst_9 {dimension_numbers = #tpu.dot_dimension_numbers<[1], [0], [0], [1], [0, 0, 1, 1], [], []>} : vector<8x128xbf16>, vector<128x128xbf16>, vector<8x128xf32> -> vector<8x128xf32>
    %c0_10 = arith.constant 0 : index
    %c128_11 = arith.constant 128 : index
    %21 = vector.load %arg3[%c0_10, %c128_11] : memref<2x384xf32, #tpu.memory_space<vmem>>, vector<1x128xf32>
    %c1_12 = arith.constant 1 : index
    %c128_13 = arith.constant 128 : index
    %22 = vector.load %arg3[%c1_12, %c128_13] : memref<2x384xf32, #tpu.memory_space<vmem>>, vector<1x128xf32>
    %23 = vector.broadcast %21 : vector<1x128xf32> to vector<8x128xf32>
    %24 = arith.mulf %20, %23 : vector<8x128xf32>
    %25 = vector.broadcast %22 : vector<1x128xf32> to vector<8x128xf32>
    %26 = arith.addf %24, %25 : vector<8x128xf32>
    %c0_14 = arith.constant 0 : index
    %c256 = arith.constant 256 : index
    %27 = vector.load %arg2[%c0_14, %c256] : memref<128x384xbf16, #tpu.memory_space<vmem>>, vector<128x128xbf16>
    %cst_15 = arith.constant dense<0.000000e+00> : vector<8x128xf32>
    %28 = tpu.matmul %10, %27, %cst_15 {dimension_numbers = #tpu.dot_dimension_numbers<[1], [0], [0], [1], [0, 0, 1, 1], [], []>} : vector<8x128xbf16>, vector<128x128xbf16>, vector<8x128xf32> -> vector<8x128xf32>
    %c0_16 = arith.constant 0 : index
    %c256_17 = arith.constant 256 : index
    %29 = vector.load %arg3[%c0_16, %c256_17] : memref<2x384xf32, #tpu.memory_space<vmem>>, vector<1x128xf32>
    %c1_18 = arith.constant 1 : index
    %c256_19 = arith.constant 256 : index
    %30 = vector.load %arg3[%c1_18, %c256_19] : memref<2x384xf32, #tpu.memory_space<vmem>>, vector<1x128xf32>
    %31 = vector.broadcast %29 : vector<1x128xf32> to vector<8x128xf32>
    %32 = arith.mulf %28, %31 : vector<8x128xf32>
    %33 = vector.broadcast %30 : vector<1x128xf32> to vector<8x128xf32>
    %34 = arith.addf %32, %33 : vector<8x128xf32>
    %35 = arith.maximumf %26, %34 : vector<8x128xf32>
    %36 = arith.addf %18, %35 : vector<8x128xf32>
    %c0_20 = arith.constant 0 : index
    %c0_21 = arith.constant 0 : index
    %37 = vector.load %arg4[%c0_20, %c0_21] : memref<8x128xf32, #tpu.memory_space<vmem>>, vector<8x128xf32>
    tpu.vector_store %arg4[%c0_20, %c0_21], %36 {strides = array<i32>} : memref<8x128xf32, #tpu.memory_space<vmem>>, vector<8x128xf32>,
    return
  }
  func.func @transform_0(%arg0: i32) -> (i32, i32) {
    %c0_i32 = arith.constant 0 : i32
    %c0_i32_0 = arith.constant 0 : i32
    return %arg0, %c0_i32 : i32, i32
  }
  func.func @transform_1(%arg0: i32) -> (i32, i32) {
    %c0_i32 = arith.constant 0 : i32
    %c0_i32_0 = arith.constant 0 : i32
    %c0_i32_1 = arith.constant 0 : i32
    return %c0_i32, %c0_i32_0 : i32, i32
  }
  func.func @transform_2(%arg0: i32) -> (i32, i32) {
    %c0_i32 = arith.constant 0 : i32
    %c0_i32_0 = arith.constant 0 : i32
    %c0_i32_1 = arith.constant 0 : i32
    return %c0_i32, %c0_i32_0 : i32, i32
  }
  func.func @transform_3(%arg0: i32) -> (i32, i32) {
    %c0_i32 = arith.constant 0 : i32
    %c0_i32_0 = arith.constant 0 : i32
    return %arg0, %c0_i32 : i32, i32
  }
}

</mosaic_0001>

<bundles_post_ra>
// kernel: tpu_custom_call.1
= control target key start
LH: loop header
LB: loop body
LE: loop exit
PB: predicated region body
PF: predicated region fallthrough
CT: control target
= control target key end

     0   :  { %8 = vsyncpa [#allocation3], 0  ;;  %s736_s0 = inlined_call_operand.hbm [shape: bf16[8,128], index: 0, kind: input, shape index: {}]   ;;  %s737_s1 = inlined_call_operand.hbm [shape: bf16[128,384], index: 1, kind: input, shape index: {}]   ;;  %s738_s2 = inlined_call_operand.hbm [shape: f32[2,384], index: 2, kind: input, shape index: {}]   ;;  %s739_s3 = inlined_call_operand.hbm [shape: f32[8,128], index: 3, kind: output, shape index: {}]  }
   0x1   :  { %9 = vsyncpa [#allocation6], 0 }
   0x2   :  { %10 = vsyncpa [#allocation4], 0  ;;  %s666_s12 = smov [#allocation5]  }
   0x3   :  { %s26_s13 = sshll.u32 %s666_s12, 4  ;;  %s27_s13 = int_to_ptr.vmem [resolvable:$true] %s26_s13 }
   0x4   :  { %s588_s14 = scalar_lea.vmem %s27_s13, 3072  ;;  %p593_p1 = scmp.lt.s32.totalorder %s27_s13, %s27_s13 }
   0x5   :  { %p589_p0 = scmp.ne.s32.totalorder %s27_s13, %s588_s14  ;;  %p594_p2 = scmp.lt.s32.totalorder %s588_s14, %s588_s14 }
   0x7   :  { %p595_p3 = por %p594_p2, %p593_p1 }
   0x9   :  { %p596_p4 = pnand %p595_p3, %p589_p0 }
   0xb   :  { %599 = shalt.err (!%p596_p4)
}
   0xc   :  { %s667_s15 = smov 192   ;;  %s668_s16 = smov 12  }
   0xd   :  { %32 = dma.hbm_to_vmem [thread:$0]  %s737_s1, 3072, %s27_s13, [#allocation6], %s667_s15, %s667_s15, %s668_s16  }
   0xe   :  { %s669_s19 = smov [#allocation2]   ;;  %s670_s21 = smov [#allocation7]  }
   0xf   :  { %s17_s20 = sshll.u32 %s669_s19, 4  ;;  %s39_s22 = sshll.u32 %s670_s21, 4  ;;  %s18_s20 = int_to_ptr.vmem [resolvable:$true] %s17_s20  ;;  %s40_s22 = int_to_ptr.vmem [resolvable:$true] %s39_s22 }
  0x10   :  { %s608_s23 = scalar_lea.vmem %s18_s20, 64  ;;  %p613_p6 = scmp.lt.s32.totalorder %s18_s20, %s18_s20 }
  0x11   :  { %p609_p5 = scmp.ne.s32.totalorder %s18_s20, %s608_s23  ;;  %p614_p7 = scmp.lt.s32.totalorder %s608_s23, %s608_s23 }
  0x13   :  { %p615_p8 = por %p614_p7, %p613_p6 }
  0x15   :  { %p616_p9 = pnand %p615_p8, %p609_p5 }
  0x17   :  { %619 = shalt.err (!%p616_p9)
}
  0x18   :  { %20 = dma.hbm_to_vmem [thread:$0]  %s736_s0, 64, %s18_s20, [#allocation3]  }
  0x19   :  { %s628_s26 = scalar_lea.vmem %s40_s22, 96  ;;  %p633_p11 = scmp.lt.s32.totalorder %s40_s22, %s40_s22 }
  0x1a   :  { %p629_p10 = scmp.ne.s32.totalorder %s40_s22, %s628_s26  ;;  %p634_p12 = scmp.lt.s32.totalorder %s628_s26, %s628_s26 }
  0x1c   :  { %p635_p13 = por %p634_p12, %p633_p11 }
  0x1e   :  { %p636_p0 = pnand %p635_p13, %p629_p10 }
  0x20   :  { %639 = shalt.err (!%p636_p0)
}
  0x21   :  { %42 = dma.hbm_to_vmem [thread:$0]  %s738_s2, 96, %s40_s22, [#allocation6]  }
  0x22   :  { %660 = dma.done.wait [#allocation3], 64  }
  0x23   :  { %661 = vsyncadd [#allocation3], 4294967232 }
  0x24   :  { %662 = dma.done.wait [#allocation6], 3168  }
  0x25   :  { %663 = vsyncadd [#allocation6], 4294964128  ;;  %v671_v0 = vmov 0.0   ;;  %v53_v1 = vld [vmem:[#allocation2] sm:$0xf]  ;;  %vm672_vm0 = vmmov 0  }
  0x26   :  { %486 = vmatprep.subr.bf16.mxu0 %v671_v0  ;;  %506 = vmatprep.subr.bf16.mxu1 %v671_v0  ;;  %v54_v2 = vunpack.c.l.bf16 %v53_v1  ;;  %v554_v3 = vld [vmem:[#allocation5 + $0xa8] ss:$12 sps:$4 sm:$0xff]   ;;  %v555_v4 = vld [vmem:[#allocation5 + $0xac] ss:$12 sps:$4 sm:$0xff]   ;;  %v556_v6 = vld [vmem:[#allocation5 + $0x90] ss:$12 sps:$4 sm:$0xff]  }
  0x27   :  { %487 = vmatpush3.bf16.msra.mxu0 %v554_v3  ;;  %507 = vmatpush3.bf16.msra.mxu1 %v555_v4  ;;  %v557_v7 = vld [vmem:[#allocation5 + $0x94] ss:$12 sps:$4 sm:$0xff]   ;;  %v558_v8 = vld [vmem:[#allocation5 + $0x78] ss:$12 sps:$4 sm:$0xff]   ;;  %v559_v9 = vld [vmem:[#allocation5 + $0x7c] ss:$12 sps:$4 sm:$0xff]  }
  0x28   :  { %v55_v5 = vmul.f32 %v54_v2, %v54_v2  ;;  %488 = vmatprep.subr.bf16.mxu0 %v671_v0  ;;  %508 = vmatprep.subr.bf16.mxu1 %v671_v0  ;;  %v560_v10 = vld [vmem:[#allocation5 + $0x60] ss:$12 sps:$4 sm:$0xff]   ;;  %v561_v11 = vld [vmem:[#allocation5 + $0x64] ss:$12 sps:$4 sm:$0xff]   ;;  %v562_v12 = vld [vmem:[#allocation5 + $0x48] ss:$12 sps:$4 sm:$0xff]  }
  0x29   :  { %v563_v13 = vld [vmem:[#allocation5 + $0x4c] ss:$12 sps:$4 sm:$0xff]   ;;  %v564_v14 = vld [vmem:[#allocation5 + $0x30] ss:$12 sps:$4 sm:$0xff]   ;;  %v565_v15 = vld [vmem:[#allocation5 + $0x34] ss:$12 sps:$4 sm:$0xff]   ;;  %502 = vmatprep.mubr.msk.bf16.mxu0 %vm672_vm0, %v671_v0  ;;  %522 = vmatprep.mubr.msk.bf16.mxu1 %vm672_vm0, %v671_v0 }
  0x2a   :  { %56 = vadd.xlane.f32.xlu0 %v55_v5  ;;  %v566_v16 = vld [vmem:[#allocation5 + $0x18] ss:$12 sps:$4 sm:$0xff]   ;;  %v567_v17 = vld [vmem:[#allocation5 + $0x1c] ss:$12 sps:$4 sm:$0xff]   ;;  %v568_v18 = vld [vmem:[#allocation5] ss:$12 sps:$4 sm:$0xff]  }
  0x2b   :  { %489 = vmatpush3.bf16.msra.mxu0 %v556_v6  ;;  %509 = vmatpush3.bf16.msra.mxu1 %v557_v7  ;;  %v569_v19 = vld [vmem:[#allocation5 + $0x4] ss:$12 sps:$4 sm:$0xff]   ;;  %v572_v27 = vld [vmem:[#allocation5 + $0x80] ss:$12 sps:$4 sm:$0xff]   ;;  %v573_v28 = vld [vmem:[#allocation5 + $0x68] ss:$12 sps:$4 sm:$0xff]  }
  0x2c   :  { %490 = vmatprep.subr.bf16.mxu0 %v671_v0  ;;  %510 = vmatprep.subr.bf16.mxu1 %v671_v0  ;;  %v570_v24 = vld [vmem:[#allocation5 + $0xb0] ss:$12 sps:$4 sm:$0xff]   ;;  %v571_v26 = vld [vmem:[#allocation5 + $0x98] ss:$12 sps:$4 sm:$0xff]   ;;  %v576_v31 = vld [vmem:[#allocation5 + $0x20] ss:$12 sps:$4 sm:$0xff]  }
  0x2d   :  { %v574_v29 = vld [vmem:[#allocation5 + $0x50] ss:$12 sps:$4 sm:$0xff]   ;;  %v575_v30 = vld [vmem:[#allocation5 + $0x38] ss:$12 sps:$4 sm:$0xff]   ;;  %v577_v32 = vld [vmem:[#allocation5 + $0x8] ss:$12 sps:$4 sm:$0xff]  }
  0x2e   :  { %v447_v41 = vld [vmem:[#allocation7 + $0x2] ss:$0 sm:$0xff]  ;;  %v437_v42 = vld [vmem:[#allocation7] ss:$0 sm:$0xff]  ;;  %v457_v43 = vld [vmem:[#allocation7 + $0x4] ss:$0 sm:$0xff] }
  0x2f   :  { %491 = vmatpush3.bf16.msra.mxu0 %v558_v8  ;;  %511 = vmatpush3.bf16.msra.mxu1 %v559_v9  ;;  %v448_v45 = vld [vmem:[#allocation7 + $0x3] ss:$0 sm:$0xff]  ;;  %v458_v47 = vld [vmem:[#allocation7 + $0x5] ss:$0 sm:$0xff]  ;;  %v438_v50 = vld [vmem:[#allocation7 + $0x1] ss:$0 sm:$0xff] }
  0x30   :  { %492 = vmatprep.subr.bf16.mxu0 %v671_v0  ;;  %512 = vmatprep.subr.bf16.mxu1 %v671_v0  ;;  %s673_s0 = smov [#allocation8]  }
  0x31   :  { %s419_s2 = sshll.u32 %s673_s0, 4  ;;  %s420_s2 = int_to_ptr.vmem [resolvable:$true] %s419_s2 }
  0x32   :  { %s640_s28 = scalar_lea.vmem %s420_s2, 128  ;;  %p645_p2 = scmp.lt.s32.totalorder %s420_s2, %s420_s2 }
  0x33   :  { %493 = vmatpush3.bf16.msra.mxu0 %v560_v10  ;;  %513 = vmatpush3.bf16.msra.mxu1 %v561_v11  ;;  %p641_p1 = scmp.ne.s32.totalorder %s420_s2, %s640_s28  ;;  %p646_p3 = scmp.lt.s32.totalorder %s640_s28, %s640_s28 }
  0x34   :  { %494 = vmatprep.subr.bf16.mxu0 %v671_v0  ;;  %514 = vmatprep.subr.bf16.mxu1 %v671_v0 }
  0x35   :  { %p647_p4 = por %p646_p3, %p645_p2 }
  0x37   :  { %495 = vmatpush3.bf16.msra.mxu0 %v562_v12  ;;  %515 = vmatpush3.bf16.msra.mxu1 %v563_v13  ;;  %p648_p5 = pnand %p647_p4, %p641_p1 }
  0x38   :  { %496 = vmatprep.subr.bf16.mxu0 %v671_v0  ;;  %516 = vmatprep.subr.bf16.mxu1 %v671_v0 }
  0x3b   :  { %497 = vmatpush3.bf16.msra.mxu0 %v564_v14  ;;  %517 = vmatpush3.bf16.msra.mxu1 %v565_v15 }
  0x3c   :  { %498 = vmatprep.subr.bf16.mxu0 %v671_v0  ;;  %518 = vmatprep.subr.bf16.mxu1 %v671_v0 }
  0x3f   :  { %499 = vmatpush3.bf16.msra.mxu0 %v566_v16  ;;  %519 = vmatpush3.bf16.msra.mxu1 %v567_v17 }
  0x40   :  { %500 = vmatprep.subr.bf16.mxu0 %v671_v0  ;;  %520 = vmatprep.subr.bf16.mxu1 %v671_v0 }
  0x43   :  { %501 = vmatpush3.bf16.msra.mxu0 %v568_v18  ;;  %521 = vmatpush3.bf16.msra.mxu1 %v569_v19 }
  0x44   :  { %526 = vmatprep.subr.bf16.mxu0 %v671_v0 }
  0xb3   :  { %v57_v20 = vpop.xlane.xlu0 %56 }
  0xb4   :  { %v58_v21 = vadd.f32 1e-12, %v57_v20 }
  0xb6   :  { %578 = vrsqrt.f32 %v58_v21 }
  0xc3   :  { %v579_v22 = vpop.eup %578 }
  0xc4   :  { %v60_v23 = vmul.f32 %v579_v22, %v54_v2 }
  0xc6   :  { %v61_v25 = vpack.c.bf16 %v60_v23, %v60_v23 }
  0xc8   :  { %503 = vmatmul.mubr.bf16.vlgmr.msra.gmra.mxu0 %v61_v25  ;;  %523 = vmatmul.mubr.bf16.vlgmr.msra.gmra.mxu1 %v61_v25 }
  0xc9   :  { %527 = vmatpush3.bf16.msra.mxu0 %v570_v24  ;;  %542 = vmatprep.mubr.msk.bf16.mxu0 %vm672_vm0, %v671_v0 }
  0xca   :  { %528 = vmatprep.subr.bf16.mxu0 %v671_v0 }
  0xcd   :  { %529 = vmatpush3.bf16.msra.mxu0 %v571_v26 }
  0xce   :  { %530 = vmatprep.subr.bf16.mxu0 %v671_v0 }
  0xd1   :  { %531 = vmatpush3.bf16.msra.mxu0 %v572_v27 }
  0xd2   :  { %532 = vmatprep.subr.bf16.mxu0 %v671_v0 }
  0xd5   :  { %533 = vmatpush3.bf16.msra.mxu0 %v573_v28 }
  0xd6   :  { %534 = vmatprep.subr.bf16.mxu0 %v671_v0 }
  0xd9   :  { %535 = vmatpush3.bf16.msra.mxu0 %v574_v29 }
  0xda   :  { %536 = vmatprep.subr.bf16.mxu0 %v671_v0 }
  0xdd   :  { %537 = vmatpush3.bf16.msra.mxu0 %v575_v30 }
  0xde   :  { %538 = vmatprep.subr.bf16.mxu0 %v671_v0 }
  0xe1   :  { %539 = vmatpush3.bf16.msra.mxu0 %v576_v31 }
  0xe2   :  { %540 = vmatprep.subr.bf16.mxu0 %v671_v0 }
  0xe5   :  { %541 = vmatpush3.bf16.msra.mxu0 %v577_v32 }
  0xe8   :  { %543 = vmatmul.mubr.bf16.vlgmr.msra.gmra.mxu0 %v61_v25 }
 0x188   :  { %v160_v33 = vpop.f32.mrf.mxu0  ;;  %v276_v34 = vpop.f32.mrf.mxu1 }
 0x189   :  { %v288_v44 = vmul.f32 %v447_v41, %v276_v34  ;;  %v172_v48 = vmul.f32 %v437_v42, %v160_v33 }
 0x18a   :  { %v504_v35 = vpop.f32.mrf.mxu0  ;;  %v524_v36 = vpop.f32.mrf.mxu1 }
 0x18b   :  { %v293_v52 = vadd.f32 %v448_v45, %v288_v44  ;;  %v177_v55 = vadd.f32 %v438_v50, %v172_v48 }
 0x18c   :  { %v163_v37 = vpop.f32.mrf.mxu0  ;;  %v279_v38 = vpop.f32.mrf.mxu1 }
 0x18e   :  { %v505_v39 = vpop.f32.mrf.mxu0  ;;  %v525_v40 = vpop.f32.mrf.mxu1 }
 0x1a8   :  { %v392_v46 = vpop.f32.mrf.mxu0 }
 0x1a9   :  { %v404_v49 = vmul.f32 %v457_v43, %v392_v46 }
 0x1aa   :  { %v544_v51 = vpop.f32.mrf.mxu0 }
 0x1ab   :  { %v409_v53 = vadd.f32 %v458_v47, %v404_v49 }
 0x1ac   :  { %v395_v54 = vpop.f32.mrf.mxu0 }
 0x1ad   :  { %v410_v56 = vmax.f32 %v293_v52, %v409_v53 }
 0x1ae   :  { %v545_v57 = vpop.f32.mrf.mxu0 }
 0x1af   :  { %v411_v58 = vadd.f32 %v410_v56, %v177_v55 }
 0x1b1   :  { %412 = vst [vmem:[#allocation8] sm:$0xff] %v411_v58 }
 0x1b2   :  { %651 = shalt.err (!%p648_p5)
}
 0x1b3   :  { %422 = dma.vmem_to_hbm [thread:$0]  %s420_s2, 128, %s739_s3, [#allocation4]  }
 0x1b4   :  { %664 = dma.done.wait [#allocation4], 128  }
 0x1b5   :  { %665 = vsyncadd [#allocation4], 4294967168 }
 0x1b6   :  { %426 = vsyncpa [#allocation3], 1 }
 0x1b7   :  { %427 = vsyncpa [#allocation6], 1 }
 0x1b8   :  { %428 = vsyncpa [#allocation4], 1 }

// kernel: tpu_custom_call.1
= control target key start
LH: loop header
LB: loop body
LE: loop exit
PB: predicated region body
PF: predicated region fallthrough
CT: control target
= control target key end

     0   :  { %8 = vsyncpa [#allocation3], 0  ;;  %s736_s0 = inlined_call_operand.hbm [shape: bf16[8,128], index: 0, kind: input, shape index: {}]   ;;  %s737_s1 = inlined_call_operand.hbm [shape: bf16[128,384], index: 1, kind: input, shape index: {}]   ;;  %s738_s2 = inlined_call_operand.hbm [shape: f32[2,384], index: 2, kind: input, shape index: {}]   ;;  %s739_s3 = inlined_call_operand.hbm [shape: f32[8,128], index: 3, kind: output, shape index: {}]  }
   0x1   :  { %9 = vsyncpa [#allocation6], 0 }
   0x2   :  { %10 = vsyncpa [#allocation4], 0  ;;  %s666_s12 = smov [#allocation5]  }
   0x3   :  { %s26_s13 = sshll.u32 %s666_s12, 4  ;;  %s27_s13 = int_to_ptr.vmem [resolvable:$true] %s26_s13 }
   0x4   :  { %s588_s14 = scalar_lea.vmem %s27_s13, 3072  ;;  %p593_p1 = scmp.lt.s32.totalorder %s27_s13, %s27_s13 }
   0x5   :  { %p589_p0 = scmp.ne.s32.totalorder %s27_s13, %s588_s14  ;;  %p594_p2 = scmp.lt.s32.totalorder %s588_s14, %s588_s14 }
   0x7   :  { %p595_p3 = por %p594_p2, %p593_p1 }
   0x9   :  { %p596_p4 = pnand %p595_p3, %p589_p0 }
   0xb   :  { %599 = shalt.err (!%p596_p4)
}
   0xc   :  { %s667_s15 = smov 192   ;;  %s668_s16 = smov 12  }
   0xd   :  { %32 = dma.hbm_to_vmem [thread:$0]  %s737_s1, 3072, %s27_s13, [#allocation6], %s667_s15, %s667_s15, %s668_s16  }
   0xe   :  { %s669_s19 = smov [#allocation2]   ;;  %s670_s21 = smov [#allocation7]  }
   0xf   :  { %s17_s20 = sshll.u32 %s669_s19, 4  ;;  %s39_s22 = sshll.u32 %s670_s21, 4  ;;  %s18_s20 = int_to_ptr.vmem [resolvable:$true] %s17_s20  ;;  %s40_s22 = int_to_ptr.vmem [resolvable:$true] %s39_s22 }
  0x10   :  { %s608_s23 = scalar_lea.vmem %s18_s20, 64  ;;  %p613_p6 = scmp.lt.s32.totalorder %s18_s20, %s18_s20 }
  0x11   :  { %p609_p5 = scmp.ne.s32.totalorder %s18_s20, %s608_s23  ;;  %p614_p7 = scmp.lt.s32.totalorder %s608_s23, %s608_s23 }
  0x13   :  { %p615_p8 = por %p614_p7, %p613_p6 }
  0x15   :  { %p616_p9 = pnand %p615_p8, %p609_p5 }
  0x17   :  { %619 = shalt.err (!%p616_p9)
}
  0x18   :  { %20 = dma.hbm_to_vmem [thread:$0]  %s736_s0, 64, %s18_s20, [#allocation3]  }
  0x19   :  { %s628_s26 = scalar_lea.vmem %s40_s22, 96  ;;  %p633_p11 = scmp.lt.s32.totalorder %s40_s22, %s40_s22 }
  0x1a   :  { %p629_p10 = scmp.ne.s32.totalorder %s40_s22, %s628_s26  ;;  %p634_p12 = scmp.lt.s32.totalorder %s628_s26, %s628_s26 }
  0x1c   :  { %p635_p13 = por %p634_p12, %p633_p11 }
  0x1e   :  { %p636_p0 = pnand %p635_p13, %p629_p10 }
  0x20   :  { %639 = shalt.err (!%p636_p0)
}
  0x21   :  { %42 = dma.hbm_to_vmem [thread:$0]  %s738_s2, 96, %s40_s22, [#allocation6]  }
  0x22   :  { %660 = dma.done.wait [#allocation3], 64  }
  0x23   :  { %661 = vsyncadd [#allocation3], 4294967232 }
  0x24   :  { %662 = dma.done.wait [#allocation6], 3168  }
  0x25   :  { %663 = vsyncadd [#allocation6], 4294964128  ;;  %v671_v0 = vmov 0.0   ;;  %v53_v1 = vld [vmem:[#allocation2] sm:$0xf]  ;;  %vm672_vm0 = vmmov 0  }
  0x26   :  { %486 = vmatprep.subr.bf16.mxu0 %v671_v0  ;;  %506 = vmatprep.subr.bf16.mxu1 %v671_v0  ;;  %v54_v2 = vunpack.c.l.bf16 %v53_v1  ;;  %v554_v3 = vld [vmem:[#allocation5 + $0xa8] ss:$12 sps:$4 sm:$0xff]   ;;  %v555_v4 = vld [vmem:[#allocation5 + $0xac] ss:$12 sps:$4 sm:$0xff]   ;;  %v556_v6 = vld [vmem:[#allocation5 + $0x90] ss:$12 sps:$4 sm:$0xff]  }
  0x27   :  { %487 = vmatpush3.bf16.msra.mxu0 %v554_v3  ;;  %507 = vmatpush3.bf16.msra.mxu1 %v555_v4  ;;  %v557_v7 = vld [vmem:[#allocation5 + $0x94] ss:$12 sps:$4 sm:$0xff]   ;;  %v558_v8 = vld [vmem:[#allocation5 + $0x78] ss:$12 sps:$4 sm:$0xff]   ;;  %v559_v9 = vld [vmem:[#allocation5 + $0x7c] ss:$12 sps:$4 sm:$0xff]  }
  0x28   :  { %v55_v5 = vmul.f32 %v54_v2, %v54_v2  ;;  %488 = vmatprep.subr.bf16.mxu0 %v671_v0  ;;  %508 = vmatprep.subr.bf16.mxu1 %v671_v0  ;;  %v560_v10 = vld [vmem:[#allocation5 + $0x60] ss:$12 sps:$4 sm:$0xff]   ;;  %v561_v11 = vld [vmem:[#allocation5 + $0x64] ss:$12 sps:$4 sm:$0xff]   ;;  %v562_v12 = vld [vmem:[#allocation5 + $0x48] ss:$12 sps:$4 sm:$0xff]  }
  0x29   :  { %v563_v13 = vld [vmem:[#allocation5 + $0x4c] ss:$12 sps:$4 sm:$0xff]   ;;  %v564_v14 = vld [vmem:[#allocation5 + $0x30] ss:$12 sps:$4 sm:$0xff]   ;;  %v565_v15 = vld [vmem:[#allocation5 + $0x34] ss:$12 sps:$4 sm:$0xff]   ;;  %502 = vmatprep.mubr.msk.bf16.mxu0 %vm672_vm0, %v671_v0  ;;  %522 = vmatprep.mubr.msk.bf16.mxu1 %vm672_vm0, %v671_v0 }
  0x2a   :  { %56 = vadd.xlane.f32.xlu0 %v55_v5  ;;  %v566_v16 = vld [vmem:[#allocation5 + $0x18] ss:$12 sps:$4 sm:$0xff]   ;;  %v567_v17 = vld [vmem:[#allocation5 + $0x1c] ss:$12 sps:$4 sm:$0xff]   ;;  %v568_v18 = vld [vmem:[#allocation5] ss:$12 sps:$4 sm:$0xff]  }
  0x2b   :  { %489 = vmatpush3.bf16.msra.mxu0 %v556_v6  ;;  %509 = vmatpush3.bf16.msra.mxu1 %v557_v7  ;;  %v569_v19 = vld [vmem:[#allocation5 + $0x4] ss:$12 sps:$4 sm:$0xff]   ;;  %v572_v27 = vld [vmem:[#allocation5 + $0x80] ss:$12 sps:$4 sm:$0xff]   ;;  %v573_v28 = vld [vmem:[#allocation5 + $0x68] ss:$12 sps:$4 sm:$0xff]  }
  0x2c   :  { %490 = vmatprep.subr.bf16.mxu0 %v671_v0  ;;  %510 = vmatprep.subr.bf16.mxu1 %v671_v0  ;;  %v570_v24 = vld [vmem:[#allocation5 + $0xb0] ss:$12 sps:$4 sm:$0xff]   ;;  %v571_v26 = vld [vmem:[#allocation5 + $0x98] ss:$12 sps:$4 sm:$0xff]   ;;  %v576_v31 = vld [vmem:[#allocation5 + $0x20] ss:$12 sps:$4 sm:$0xff]  }
  0x2d   :  { %v574_v29 = vld [vmem:[#allocation5 + $0x50] ss:$12 sps:$4 sm:$0xff]   ;;  %v575_v30 = vld [vmem:[#allocation5 + $0x38] ss:$12 sps:$4 sm:$0xff]   ;;  %v577_v32 = vld [vmem:[#allocation5 + $0x8] ss:$12 sps:$4 sm:$0xff]  }
  0x2e   :  { %v447_v41 = vld [vmem:[#allocation7 + $0x2] ss:$0 sm:$0xff]  ;;  %v437_v42 = vld [vmem:[#allocation7] ss:$0 sm:$0xff]  ;;  %v457_v43 = vld [vmem:[#allocation7 + $0x4] ss:$0 sm:$0xff] }
  0x2f   :  { %491 = vmatpush3.bf16.msra.mxu0 %v558_v8  ;;  %511 = vmatpush3.bf16.msra.mxu1 %v559_v9  ;;  %v448_v45 = vld [vmem:[#allocation7 + $0x3] ss:$0 sm:$0xff]  ;;  %v458_v47 = vld [vmem:[#allocation7 + $0x5] ss:$0 sm:$0xff]  ;;  %v438_v50 = vld [vmem:[#allocation7 + $0x1] ss:$0 sm:$0xff] }
  0x30   :  { %492 = vmatprep.subr.bf16.mxu0 %v671_v0  ;;  %512 = vmatprep.subr.bf16.mxu1 %v671_v0  ;;  %s673_s0 = smov [#allocation8]  }
  0x31   :  { %s419_s2 = sshll.u32 %s673_s0, 4  ;;  %s420_s2 = int_to_ptr.vmem [resolvable:$true] %s419_s2 }
  0x32   :  { %s640_s28 = scalar_lea.vmem %s420_s2, 128  ;;  %p645_p2 = scmp.lt.s32.totalorder %s420_s2, %s420_s2 }
  0x33   :  { %493 = vmatpush3.bf16.msra.mxu0 %v560_v10  ;;  %513 = vmatpush3.bf16.msra.mxu1 %v561_v11  ;;  %p641_p1 = scmp.ne.s32.totalorder %s420_s2, %s640_s28  ;;  %p646_p3 = scmp.lt.s32.totalorder %s640_s28, %s640_s28 }
  0x34   :  { %494 = vmatprep.subr.bf16.mxu0 %v671_v0  ;;  %514 = vmatprep.subr.bf16.mxu1 %v671_v0 }
  0x35   :  { %p647_p4 = por %p646_p3, %p645_p2 }
  0x37   :  { %495 = vmatpush3.bf16.msra.mxu0 %v562_v12  ;;  %515 = vmatpush3.bf16.msra.mxu1 %v563_v13  ;;  %p648_p5 = pnand %p647_p4, %p641_p1 }
  0x38   :  { %496 = vmatprep.subr.bf16.mxu0 %v671_v0  ;;  %516 = vmatprep.subr.bf16.mxu1 %v671_v0 }
  0x3b   :  { %497 = vmatpush3.bf16.msra.mxu0 %v564_v14  ;;  %517 = vmatpush3.bf16.msra.mxu1 %v565_v15 }
  0x3c   :  { %498 = vmatprep.subr.bf16.mxu0 %v671_v0  ;;  %518 = vmatprep.subr.bf16.mxu1 %v671_v0 }
  0x3f   :  { %499 = vmatpush3.bf16.msra.mxu0 %v566_v16  ;;  %519 = vmatpush3.bf16.msra.mxu1 %v567_v17 }
  0x40   :  { %500 = vmatprep.subr.bf16.mxu0 %v671_v0  ;;  %520 = vmatprep.subr.bf16.mxu1 %v671_v0 }
  0x43   :  { %501 = vmatpush3.bf16.msra.mxu0 %v568_v18  ;;  %521 = vmatpush3.bf16.msra.mxu1 %v569_v19 }
  0x44   :  { %526 = vmatprep.subr.bf16.mxu0 %v671_v0 }
  0xb3   :  { %v57_v20 = vpop.xlane.xlu0 %56 }
  0xb4   :  { %v58_v21 = vadd.f32 1e-12, %v57_v20 }
  0xb6   :  { %578 = vrsqrt.f32 %v58_v21 }
  0xc3   :  { %v579_v22 = vpop.eup %578 }
  0xc4   :  { %v60_v23 = vmul.f32 %v579_v22, %v54_v2 }
  0xc6   :  { %v61_v25 = vpack.c.bf16 %v60_v23, %v60_v23 }
  0xc8   :  { %503 = vmatmul.mubr.bf16.vlgmr.msra.gmra.mxu0 %v61_v25  ;;  %523 = vmatmul.mubr.bf16.vlgmr.msra.gmra.mxu1 %v61_v25 }
  0xc9   :  { %527 = vmatpush3.bf16.msra.mxu0 %v570_v24  ;;  %542 = vmatprep.mubr.msk.bf16.mxu0 %vm672_vm0, %v671_v0 }
  0xca   :  { %528 = vmatprep.subr.bf16.mxu0 %v671_v0 }
  0xcd   :  { %529 = vmatpush3.bf16.msra.mxu0 %v571_v26 }
  0xce   :  { %530 = vmatprep.subr.bf16.mxu0 %v671_v0 }
  0xd1   :  { %531 = vmatpush3.bf16.msra.mxu0 %v572_v27 }
  0xd2   :  { %532 = vmatprep.subr.bf16.mxu0 %v671_v0 }
  0xd5   :  { %533 = vmatpush3.bf16.msra.mxu0 %v573_v28 }
  0xd6   :  { %534 = vmatprep.subr.bf16.mxu0 %v671_v0 }
  0xd9   :  { %535 = vmatpush3.bf16.msra.mxu0 %v574_v29 }
  0xda   :  { %536 = vmatprep.subr.bf16.mxu0 %v671_v0 }
  0xdd   :  { %537 = vmatpush3.bf16.msra.mxu0 %v575_v30 }
  0xde   :  { %538 = vmatprep.subr.bf16.mxu0 %v671_v0 }
  0xe1   :  { %539 = vmatpush3.bf16.msra.mxu0 %v576_v31 }
  0xe2   :  { %540 = vmatprep.subr.bf16.mxu0 %v671_v0 }
  0xe5   :  { %541 = vmatpush3.bf16.msra.mxu0 %v577_v32 }
  0xe8   :  { %543 = vmatmul.mubr.bf16.vlgmr.msra.gmra.mxu0 %v61_v25 }
 0x188   :  { %v160_v33 = vpop.f32.mrf.mxu0  ;;  %v276_v34 = vpop.f32.mrf.mxu1 }
 0x189   :  { %v288_v44 = vmul.f32 %v447_v41, %v276_v34  ;;  %v172_v48 = vmul.f32 %v437_v42, %v160_v33 }
 0x18a   :  { %v504_v35 = vpop.f32.mrf.mxu0  ;;  %v524_v36 = vpop.f32.mrf.mxu1 }
 0x18b   :  { %v293_v52 = vadd.f32 %v448_v45, %v288_v44  ;;  %v177_v55 = vadd.f32 %v438_v50, %v172_v48 }
 0x18c   :  { %v163_v37 = vpop.f32.mrf.mxu0  ;;  %v279_v38 = vpop.f32.mrf.mxu1 }
 0x18e   :  { %v505_v39 = vpop.f32.mrf.mxu0  ;;  %v525_v40 = vpop.f32.mrf.mxu1 }
 0x1a8   :  { %v392_v46 = vpop.f32.mrf.mxu0 }
 0x1a9   :  { %v404_v49 = vmul.f32 %v457_v43, %v392_v46 }
 0x1aa   :  { %v544_v51 = vpop.f32.mrf.mxu0 }
 0x1ab   :  { %v409_v53 = vadd.f32 %v458_v47, %v404_v49 }
 0x1ac   :  { %v395_v54 = vpop.f32.mrf.mxu0 }
 0x1ad   :  { %v410_v56 = vmax.f32 %v293_v52, %v409_v53 }
 0x1ae   :  { %v545_v57 = vpop.f32.mrf.mxu0 }
 0x1af   :  { %v411_v58 = vadd.f32 %v410_v56, %v177_v55 }
 0x1b1   :  { %412 = vst [vmem:[#allocation8] sm:$0xff] %v411_v58 }
 0x1b2   :  { %651 = shalt.err (!%p648_p5)
}
 0x1b3   :  { %422 = dma.vmem_to_hbm [thread:$0]  %s420_s2, 128, %s739_s3, [#allocation4]  }
 0x1b4   :  { %664 = dma.done.wait [#allocation4], 128  }
 0x1b5   :  { %665 = vsyncadd [#allocation4], 4294967168 }
 0x1b6   :  { %426 = vsyncpa [#allocation3], 1 }
 0x1b7   :  { %427 = vsyncpa [#allocation6], 1 }
 0x1b8   :  { %428 = vsyncpa [#allocation4], 1 }

</bundles_post_ra>
